<compile_context>
chip_gen: v7x
topology: tpu7x:2x2x1
jax: 0.10.0
libtpu: 0.0.40
codegen_flags: <defaults>
</compile_context>

<pallas_src>
import functools

import jax
import jax.numpy as jnp
import numpy as np
from jax import lax
from jax.experimental import pallas as pl
from jax.experimental.pallas import tpu as pltpu

EPS = 1e-5
VMEM_LIMIT = 32 * 1024 * 1024   # safe scoped limit on v5e / v6e / v7x
BLOCK_BUDGET = 20 * 1024 * 1024  # budget for per-step blocks + temporaries


def _conv_tile(x_ref, n, w_ref, ml_ref, mr_ref, *, W, HW):
    """3x3 conv of one batch element as 9 shifted-slice MXU matmuls.

    x_ref : (NB, Cin, HW + 2*W + 2) bf16  -- H-padded, flattened spatial, sentinels
    n     : static batch index within the block
    w_ref : (9, Cout, Cin)          bf16  -- tap-major weights
    returns (Cout, HW) float32
    """
    acc = [None, None, None]  # one accumulator per kw column (for boundary masks)
    for kh in range(3):
        for kw in range(3):
            shift = kh * W + kw                               # static lane offset
            xs = x_ref[n, :, shift:shift + HW]                # (Cin, HW) bf16
            c = jnp.dot(w_ref[3 * kh + kw], xs,
                        preferred_element_type=jnp.float32)   # (Cout, HW) f32
            acc[kw] = c if acc[kw] is None else acc[kw] + c
    # kw=0 taps wrapped through column w==0, kw=2 taps through w==W-1: mask them.
    return acc[0] * ml_ref[...] + acc[1] + acc[2] * mr_ref[...]


# ----------------------------- fused single-call path ------------------------


def _fused_kernel(x_ref, w_ref, ml_ref, mr_ref, g_ref, b_ref, out_ref, conv_ref,
                  *, W, HW, Cout, NB, count):
    s1 = None
    s2 = None
    for n in range(NB):
        c = _conv_tile(x_ref, n, w_ref, ml_ref, mr_ref, W=W, HW=HW)  # (Cout, HW) f32
        conv_ref[n] = c
        a = jnp.sum(c, axis=1, keepdims=True)                        # (Cout, 1)
        b = jnp.sum(c * c, axis=1, keepdims=True)
        s1 = a if s1 is None else s1 + a
        s2 = b if s2 is None else s2 + b

    mean = s1 / count
    var = jnp.maximum(s2 / count - mean * mean, 0.0)                 # biased var
    scale = g_ref[...] * lax.rsqrt(var + EPS)
    shift = b_ref[...] - mean * scale

    for n in range(NB):
        # Residual x[:, :-1]: centre tap (lane offset W+1) of the first Cout
        # channels, read straight from the activation block already in VMEM.
        res = x_ref[n, 0:Cout, W + 1:W + 1 + HW].astype(jnp.float32)
        out_ref[n] = (conv_ref[n] * scale + shift + res).astype(out_ref.dtype)


# ----------------------------- two-pass fallback path ------------------------


def _stats_kernel(x_ref, w_ref, ml_ref, mr_ref, g_ref, b_ref, stat_ref,
                  *, W, HW, NB, count):
    @pl.when(pl.program_id(0) == 0)
    def _init():
        stat_ref[...] = jnp.zeros_like(stat_ref)

    s1 = None
    s2 = None
    for n in range(NB):
        c = _conv_tile(x_ref, n, w_ref, ml_ref, mr_ref, W=W, HW=HW)
        a = jnp.sum(c, axis=1, keepdims=True)
        b = jnp.sum(c * c, axis=1, keepdims=True)
        s1 = a if s1 is None else s1 + a
        s2 = b if s2 is None else s2 + b

    stat_ref[:, 0:1] += s1
    stat_ref[:, 1:2] += s2

    @pl.when(pl.program_id(0) == pl.num_programs(0) - 1)
    def _finalize():
        mean = stat_ref[:, 0:1] / count
        var = jnp.maximum(stat_ref[:, 1:2] / count - mean * mean, 0.0)
        scale = g_ref[...] * lax.rsqrt(var + EPS)
        shift = b_ref[...] - mean * scale
        stat_ref[:, 0:1] = scale
        stat_ref[:, 1:2] = shift


def _apply_kernel(x_ref, w_ref, ml_ref, mr_ref, stat_ref, out_ref,
                  *, W, HW, Cout, NB):
    scale = stat_ref[:, 0:1]
    shift = stat_ref[:, 1:2]
    for n in range(NB):
        conv = _conv_tile(x_ref, n, w_ref, ml_ref, mr_ref, W=W, HW=HW)
        res = x_ref[n, 0:Cout, W + 1:W + 1 + HW].astype(jnp.float32)
        out_ref[n] = (conv * scale + shift + res).astype(out_ref.dtype)


# ----------------------------------- wrapper ---------------------------------


def conv_bn_residual_forward(x_nchw, weight, gamma, beta, *, force_multipass=False):
    """x_nchw: (N, hiddens+1, H, W); weight: (hiddens, hiddens+1, 3, 3)."""
    N, Cin, H, W = x_nchw.shape
    Cout = weight.shape[0]
    HW = H * W
    L = HW + 2 * W + 2  # flattened spatial, H-padded, +1 sentinel each end

    # Channel-major activation: pad one zero row top/bottom, flatten (H+2, W),
    # then pad one zero element at each end so every tap is a pure lane shift.
    xpad = jnp.pad(x_nchw, ((0, 0), (0, 0), (1, 1), (0, 0)))           # (N,Cin,H+2,W)
    xflat = jnp.pad(xpad.reshape(N, Cin, (H + 2) * W), ((0, 0), (0, 0), (1, 1)))
    xflat = xflat.astype(jnp.bfloat16)                                  # (N, Cin, L)

    # PyTorch weight (Cout, Cin, 3, 3) -> tap-major (9, Cout, Cin), bf16 for MXU.
    w_taps = jnp.transpose(weight, (2, 3, 0, 1)).reshape(9, Cout, Cin)
    w_taps = w_taps.astype(jnp.bfloat16)

    # Lane masks killing taps that wrapped across the (unpadded) W boundary.
    col = jnp.arange(HW, dtype=jnp.int32) % W
    mask_l = (col != 0).astype(jnp.float32).reshape(1, HW)
    mask_r = (col != W - 1).astype(jnp.float32).reshape(1, HW)

    g2 = gamma.astype(jnp.float32).reshape(Cout, 1)
    b2 = beta.astype(jnp.float32).reshape(Cout, 1)

    count = float(N * HW)
    out_dtype = x_nchw.dtype

    # Conservative per-batch-element VMEM footprint (double-buffered blocks +
    # accumulators / temporaries), used to pick the batch tile.
    per_batch = 2 * Cin * L * 2 + 2 * Cout * HW * 4 + 6 * Cout * HW * 4
    fixed = 9 * Cout * Cin * 2 + 2 * HW * 4 + 4 * Cout * 4

    w_spec = pl.BlockSpec((9, Cout, Cin), lambda i: (0, 0, 0))
    m_spec = pl.BlockSpec((1, HW), lambda i: (0, 0))
    v_spec = pl.BlockSpec((Cout, 1), lambda i: (0, 0))
    s_spec = pl.BlockSpec((Cout, 2), lambda i: (0, 0))

    # ---------------- fast path: whole batch in one kernel launch ------------
    if (not force_multipass) and (N * per_batch + fixed <= BLOCK_BUDGET):
        out = pl.pallas_call(
            functools.partial(_fused_kernel, W=W, HW=HW, Cout=Cout, NB=N,
                              count=count),
            out_shape=jax.ShapeDtypeStruct((N, Cout, HW), out_dtype),
            grid=(1,),
            in_specs=[pl.BlockSpec((N, Cin, L), lambda i: (0, 0, 0)),
                      w_spec, m_spec, m_spec, v_spec, v_spec],
            out_specs=pl.BlockSpec((N, Cout, HW), lambda i: (0, 0, 0)),
            scratch_shapes=[pltpu.VMEM((N, Cout, HW), jnp.float32)],
            compiler_params=pltpu.CompilerParams(
                dimension_semantics=("arbitrary",),
                vmem_limit_bytes=VMEM_LIMIT),
        )(xflat, w_taps, mask_l, mask_r, g2, b2)
        return out.reshape(N, Cout, H, W)   # already NCHW: free reshape

    # ---------------- fallback: two pipelined passes over a batch grid -------
    NB = 1
    for d in range(N, 0, -1):
        if N % d == 0 and d * per_batch + fixed <= BLOCK_BUDGET:
            NB = d
            break

    x_spec = pl.BlockSpec((NB, Cin, L), lambda i: (i, 0, 0))
    o_spec = pl.BlockSpec((NB, Cout, HW), lambda i: (i, 0, 0))
    grid = (N // NB,)

    # pass 1: BN statistics -> per-channel (scale, shift), cross-grid reduction
    stats = pl.pallas_call(
        functools.partial(_stats_kernel, W=W, HW=HW, NB=NB, count=count),
        out_shape=jax.ShapeDtypeStruct((Cout, 2), jnp.float32),
        grid=grid,
        in_specs=[x_spec, w_spec, m_spec, m_spec, v_spec, v_spec],
        out_specs=s_spec,
        compiler_params=pltpu.CompilerParams(
            dimension_semantics=("arbitrary",),
            vmem_limit_bytes=VMEM_LIMIT),
    )(xflat, w_taps, mask_l, mask_r, g2, b2)

    # pass 2: conv * scale + shift + residual, lane-dense channel-major out
    out = pl.pallas_call(
        functools.partial(_apply_kernel, W=W, HW=HW, Cout=Cout, NB=NB),
        out_shape=jax.ShapeDtypeStruct((N, Cout, HW), out_dtype),
        grid=grid,
        in_specs=[x_spec, w_spec, m_spec, m_spec, s_spec],
        out_specs=o_spec,
        compiler_params=pltpu.CompilerParams(
            dimension_semantics=("parallel",),
            vmem_limit_bytes=VMEM_LIMIT),
    )(xflat, w_taps, mask_l, mask_r, stats)

    return out.reshape(N, Cout, H, W)


def reference_forward(x_nchw, weight, gamma, beta):
    """Pure-JAX f32 reference with the same semantics."""
    conv = lax.conv_general_dilated(
        x_nchw.astype(jnp.float32), weight.astype(jnp.float32),
        window_strides=(1, 1), padding=((1, 1), (1, 1)),
        dimension_numbers=("NCHW", "OIHW", "NCHW"))
    mean = conv.mean(axis=(0, 2, 3), keepdims=True)
    var = jnp.square(conv - mean).mean(axis=(0, 2, 3), keepdims=True)
    y = (conv - mean) * lax.rsqrt(var + EPS)
    y = y * gamma[None, :, None, None] + beta[None, :, None, None]
    return y + x_nchw[:, :-1]


if __name__ == "__main__":
    hiddens = 4
    N, H, W = 2, 16, 16
    Cin = hiddens + 1

    key = jax.random.PRNGKey(0)
    kx, kw = jax.random.split(key)
    x = jax.random.normal(kx, (N, Cin, H, W), dtype=jnp.float32)
    weight = jax.random.normal(kw, (hiddens, Cin, 3, 3), dtype=jnp.float32) * 0.1
    gamma = jnp.ones((hiddens,), jnp.float32)   # fresh BatchNorm2d defaults
    beta = jnp.zeros((hiddens,), jnp.float32)

    fused_fn = jax.jit(conv_bn_residual_forward)
    multi_fn = jax.jit(functools.partial(conv_bn_residual_forward,
                                         force_multipass=True))

    out_fused = jax.block_until_ready(fused_fn(x, weight, gamma, beta))
    out_multi = jax.block_until_ready(multi_fn(x, weight, gamma, beta))
    ref = jax.block_until_ready(reference_forward(x, weight, gamma, beta))

    # bf16 MXU path -> compare against the f32 reference with a looser tolerance.
    np.testing.assert_allclose(np.asarray(out_fused), np.asarray(ref),
                               atol=5e-2, rtol=5e-2)
    np.testing.assert_allclose(np.asarray(out_multi), np.asarray(ref),
                               atol=5e-2, rtol=5e-2)
    print("KERNEL_OK")
</pallas_src>

<mosaic_0001>
module attributes {stable_mosaic.version = 11 : i64} {
  func.func @_fused_kernel(%arg0: i32, %arg1: memref<2x5x290xbf16, #tpu.memory_space<vmem>>, %arg2: memref<9x4x5xbf16, #tpu.memory_space<vmem>>, %arg3: memref<1x256xf32, #tpu.memory_space<vmem>>, %arg4: memref<1x256xf32, #tpu.memory_space<vmem>>, %arg5: memref<4x1xf32, #tpu.memory_space<vmem>>, %arg6: memref<4x1xf32, #tpu.memory_space<vmem>>, %arg7: memref<2x4x256xf32, #tpu.memory_space<vmem>>, %arg8: memref<2x4x256xf32, #tpu.memory_space<vmem>>) attributes {dimension_semantics = [#tpu.dimension_semantics<arbitrary>], iteration_bounds = array<i64: 1>, scalar_prefetch = 0 : i64, scratch_operands = 1 : i64, tpu.core_type = #tpu.core_type<tc>, window_params = [{pipeline_mode = #tpu.pipeline_mode<synchronous>, transform_indices = @transform_0, window_bounds = array<i64: 2, 5, 290>}, {pipeline_mode = #tpu.pipeline_mode<synchronous>, transform_indices = @transform_1, window_bounds = array<i64: 9, 4, 5>}, {pipeline_mode = #tpu.pipeline_mode<synchronous>, transform_indices = @transform_2, window_bounds = array<i64: 1, 256>}, {pipeline_mode = #tpu.pipeline_mode<synchronous>, transform_indices = @transform_3, window_bounds = array<i64: 1, 256>}, {pipeline_mode = #tpu.pipeline_mode<synchronous>, transform_indices = @transform_4, window_bounds = array<i64: 4, 1>}, {pipeline_mode = #tpu.pipeline_mode<synchronous>, transform_indices = @transform_5, window_bounds = array<i64: 4, 1>}, {pipeline_mode = #tpu.pipeline_mode<synchronous>, transform_indices = @transform_6, window_bounds = array<i64: 2, 4, 256>}]} {
    %c0 = arith.constant 0 : index
    %c0_0 = arith.constant 0 : index
    %c0_1 = arith.constant 0 : index
    %0 = vector.load %arg1[%c0, %c0_0, %c0_1] : memref<2x5x290xbf16, #tpu.memory_space<vmem>>, vector<1x5x256xbf16>
    %1 = vector.shape_cast %0 : vector<1x5x256xbf16> to vector<5x256xbf16>
    %c0_2 = arith.constant 0 : index
    %c0_3 = arith.constant 0 : index
    %c0_4 = arith.constant 0 : index
    %2 = vector.load %arg2[%c0_2, %c0_3, %c0_4] : memref<9x4x5xbf16, #tpu.memory_space<vmem>>, vector<1x4x5xbf16>
    %3 = vector.shape_cast %2 : vector<1x4x5xbf16> to vector<4x5xbf16>
    %cst = arith.constant dense<0.000000e+00> : vector<4x256xf32>
    %4 = tpu.matmul %3, %1, %cst {dimension_numbers = #tpu.dot_dimension_numbers<[1], [0], [0], [1], [0, 0, 1, 1], [], []>} : vector<4x5xbf16>, vector<5x256xbf16>, vector<4x256xf32> -> vector<4x256xf32>
    %c0_5 = arith.constant 0 : index
    %c0_6 = arith.constant 0 : index
    %c1 = arith.constant 1 : index
    %5 = vector.load %arg1[%c0_5, %c0_6, %c1] : memref<2x5x290xbf16, #tpu.memory_space<vmem>>, vector<1x5x256xbf16>
    %6 = vector.shape_cast %5 : vector<1x5x256xbf16> to vector<5x256xbf16>
    %c1_7 = arith.constant 1 : index
    %c0_8 = arith.constant 0 : index
    %c0_9 = arith.constant 0 : index
    %7 = vector.load %arg2[%c1_7, %c0_8, %c0_9] : memref<9x4x5xbf16, #tpu.memory_space<vmem>>, vector<1x4x5xbf16>
    %8 = vector.shape_cast %7 : vector<1x4x5xbf16> to vector<4x5xbf16>
    %cst_10 = arith.constant dense<0.000000e+00> : vector<4x256xf32>
    %9 = tpu.matmul %8, %6, %cst_10 {dimension_numbers = #tpu.dot_dimension_numbers<[1], [0], [0], [1], [0, 0, 1, 1], [], []>} : vector<4x5xbf16>, vector<5x256xbf16>, vector<4x256xf32> -> vector<4x256xf32>
    %c0_11 = arith.constant 0 : index
    %c0_12 = arith.constant 0 : index
    %c2 = arith.constant 2 : index
    %10 = vector.load %arg1[%c0_11, %c0_12, %c2] : memref<2x5x290xbf16, #tpu.memory_space<vmem>>, vector<1x5x256xbf16>
    %11 = vector.shape_cast %10 : vector<1x5x256xbf16> to vector<5x256xbf16>
    %c2_13 = arith.constant 2 : index
    %c0_14 = arith.constant 0 : index
    %c0_15 = arith.constant 0 : index
    %12 = vector.load %arg2[%c2_13, %c0_14, %c0_15] : memref<9x4x5xbf16, #tpu.memory_space<vmem>>, vector<1x4x5xbf16>
    %13 = vector.shape_cast %12 : vector<1x4x5xbf16> to vector<4x5xbf16>
    %cst_16 = arith.constant dense<0.000000e+00> : vector<4x256xf32>
    %14 = tpu.matmul %13, %11, %cst_16 {dimension_numbers = #tpu.dot_dimension_numbers<[1], [0], [0], [1], [0, 0, 1, 1], [], []>} : vector<4x5xbf16>, vector<5x256xbf16>, vector<4x256xf32> -> vector<4x256xf32>
    %c0_17 = arith.constant 0 : index
    %c0_18 = arith.constant 0 : index
    %c16 = arith.constant 16 : index
    %15 = vector.load %arg1[%c0_17, %c0_18, %c16] : memref<2x5x290xbf16, #tpu.memory_space<vmem>>, vector<1x5x256xbf16>
    %16 = vector.shape_cast %15 : vector<1x5x256xbf16> to vector<5x256xbf16>
    %c3 = arith.constant 3 : index
    %c0_19 = arith.constant 0 : index
    %c0_20 = arith.constant 0 : index
    %17 = vector.load %arg2[%c3, %c0_19, %c0_20] : memref<9x4x5xbf16, #tpu.memory_space<vmem>>, vector<1x4x5xbf16>
    %18 = vector.shape_cast %17 : vector<1x4x5xbf16> to vector<4x5xbf16>
    %cst_21 = arith.constant dense<0.000000e+00> : vector<4x256xf32>
    %19 = tpu.matmul %18, %16, %cst_21 {dimension_numbers = #tpu.dot_dimension_numbers<[1], [0], [0], [1], [0, 0, 1, 1], [], []>} : vector<4x5xbf16>, vector<5x256xbf16>, vector<4x256xf32> -> vector<4x256xf32>
    %20 = arith.addf %4, %19 : vector<4x256xf32>
    %c0_22 = arith.constant 0 : index
    %c0_23 = arith.constant 0 : index
    %c17 = arith.constant 17 : index
    %21 = vector.load %arg1[%c0_22, %c0_23, %c17] : memref<2x5x290xbf16, #tpu.memory_space<vmem>>, vector<1x5x256xbf16>
    %22 = vector.shape_cast %21 : vector<1x5x256xbf16> to vector<5x256xbf16>
    %c4 = arith.constant 4 : index
    %c0_24 = arith.constant 0 : index
    %c0_25 = arith.constant 0 : index
    %23 = vector.load %arg2[%c4, %c0_24, %c0_25] : memref<9x4x5xbf16, #tpu.memory_space<vmem>>, vector<1x4x5xbf16>
    %24 = vector.shape_cast %23 : vector<1x4x5xbf16> to vector<4x5xbf16>
    %cst_26 = arith.constant dense<0.000000e+00> : vector<4x256xf32>
    %25 = tpu.matmul %24, %22, %cst_26 {dimension_numbers = #tpu.dot_dimension_numbers<[1], [0], [0], [1], [0, 0, 1, 1], [], []>} : vector<4x5xbf16>, vector<5x256xbf16>, vector<4x256xf32> -> vector<4x256xf32>
    %26 = arith.addf %9, %25 : vector<4x256xf32>
    %c0_27 = arith.constant 0 : index
    %c0_28 = arith.constant 0 : index
    %c18 = arith.constant 18 : index
    %27 = vector.load %arg1[%c0_27, %c0_28, %c18] : memref<2x5x290xbf16, #tpu.memory_space<vmem>>, vector<1x5x256xbf16>
    %28 = vector.shape_cast %27 : vector<1x5x256xbf16> to vector<5x256xbf16>
    %c5 = arith.constant 5 : index
    %c0_29 = arith.constant 0 : index
    %c0_30 = arith.constant 0 : index
    %29 = vector.load %arg2[%c5, %c0_29, %c0_30] : memref<9x4x5xbf16, #tpu.memory_space<vmem>>, vector<1x4x5xbf16>
    %30 = vector.shape_cast %29 : vector<1x4x5xbf16> to vector<4x5xbf16>
    %cst_31 = arith.constant dense<0.000000e+00> : vector<4x256xf32>
    %31 = tpu.matmul %30, %28, %cst_31 {dimension_numbers = #tpu.dot_dimension_numbers<[1], [0], [0], [1], [0, 0, 1, 1], [], []>} : vector<4x5xbf16>, vector<5x256xbf16>, vector<4x256xf32> -> vector<4x256xf32>
    %32 = arith.addf %14, %31 : vector<4x256xf32>
    %c0_32 = arith.constant 0 : index
    %c0_33 = arith.constant 0 : index
    %c32 = arith.constant 32 : index
    %33 = vector.load %arg1[%c0_32, %c0_33, %c32] : memref<2x5x290xbf16, #tpu.memory_space<vmem>>, vector<1x5x256xbf16>
    %34 = vector.shape_cast %33 : vector<1x5x256xbf16> to vector<5x256xbf16>
    %c6 = arith.constant 6 : index
    %c0_34 = arith.constant 0 : index
    %c0_35 = arith.constant 0 : index
    %35 = vector.load %arg2[%c6, %c0_34, %c0_35] : memref<9x4x5xbf16, #tpu.memory_space<vmem>>, vector<1x4x5xbf16>
    %36 = vector.shape_cast %35 : vector<1x4x5xbf16> to vector<4x5xbf16>
    %cst_36 = arith.constant dense<0.000000e+00> : vector<4x256xf32>
    %37 = tpu.matmul %36, %34, %cst_36 {dimension_numbers = #tpu.dot_dimension_numbers<[1], [0], [0], [1], [0, 0, 1, 1], [], []>} : vector<4x5xbf16>, vector<5x256xbf16>, vector<4x256xf32> -> vector<4x256xf32>
    %38 = arith.addf %20, %37 : vector<4x256xf32>
    %c0_37 = arith.constant 0 : index
    %c0_38 = arith.constant 0 : index
    %c33 = arith.constant 33 : index
    %39 = vector.load %arg1[%c0_37, %c0_38, %c33] : memref<2x5x290xbf16, #tpu.memory_space<vmem>>, vector<1x5x256xbf16>
    %40 = vector.shape_cast %39 : vector<1x5x256xbf16> to vector<5x256xbf16>
    %c7 = arith.constant 7 : index
    %c0_39 = arith.constant 0 : index
    %c0_40 = arith.constant 0 : index
    %41 = vector.load %arg2[%c7, %c0_39, %c0_40] : memref<9x4x5xbf16, #tpu.memory_space<vmem>>, vector<1x4x5xbf16>
    %42 = vector.shape_cast %41 : vector<1x4x5xbf16> to vector<4x5xbf16>
    %cst_41 = arith.constant dense<0.000000e+00> : vector<4x256xf32>
    %43 = tpu.matmul %42, %40, %cst_41 {dimension_numbers = #tpu.dot_dimension_numbers<[1], [0], [0], [1], [0, 0, 1, 1], [], []>} : vector<4x5xbf16>, vector<5x256xbf16>, vector<4x256xf32> -> vector<4x256xf32>
    %44 = arith.addf %26, %43 : vector<4x256xf32>
    %c0_42 = arith.constant 0 : index
    %c0_43 = arith.constant 0 : index
    %c34 = arith.constant 34 : index
    %45 = vector.load %arg1[%c0_42, %c0_43, %c34] : memref<2x5x290xbf16, #tpu.memory_space<vmem>>, vector<1x5x256xbf16>
    %46 = vector.shape_cast %45 : vector<1x5x256xbf16> to vector<5x256xbf16>
    %c8 = arith.constant 8 : index
    %c0_44 = arith.constant 0 : index
    %c0_45 = arith.constant 0 : index
    %47 = vector.load %arg2[%c8, %c0_44, %c0_45] : memref<9x4x5xbf16, #tpu.memory_space<vmem>>, vector<1x4x5xbf16>
    %48 = vector.shape_cast %47 : vector<1x4x5xbf16> to vector<4x5xbf16>
    %cst_46 = arith.constant dense<0.000000e+00> : vector<4x256xf32>
    %49 = tpu.matmul %48, %46, %cst_46 {dimension_numbers = #tpu.dot_dimension_numbers<[1], [0], [0], [1], [0, 0, 1, 1], [], []>} : vector<4x5xbf16>, vector<5x256xbf16>, vector<4x256xf32> -> vector<4x256xf32>
    %50 = arith.addf %32, %49 : vector<4x256xf32>
    %c0_47 = arith.constant 0 : index
    %c0_48 = arith.constant 0 : index
    %51 = vector.load %arg3[%c0_47, %c0_48] : memref<1x256xf32, #tpu.memory_space<vmem>>, vector<1x256xf32>
    %52 = vector.broadcast %51 : vector<1x256xf32> to vector<4x256xf32>
    %53 = arith.mulf %38, %52 : vector<4x256xf32>
    %54 = arith.addf %53, %44 : vector<4x256xf32>
    %c0_49 = arith.constant 0 : index
    %c0_50 = arith.constant 0 : index
    %55 = vector.load %arg4[%c0_49, %c0_50] : memref<1x256xf32, #tpu.memory_space<vmem>>, vector<1x256xf32>
    %56 = vector.broadcast %55 : vector<1x256xf32> to vector<4x256xf32>
    %57 = arith.mulf %50, %56 : vector<4x256xf32>
    %58 = arith.addf %54, %57 : vector<4x256xf32>
    %c0_51 = arith.constant 0 : index
    %c0_52 = arith.constant 0 : index
    %c0_53 = arith.constant 0 : index
    %59 = vector.load %arg8[%c0_51, %c0_52, %c0_53] : memref<2x4x256xf32, #tpu.memory_space<vmem>>, vector<1x4x256xf32>
    %60 = vector.shape_cast %59 : vector<1x4x256xf32> to vector<4x256xf32>
    %61 = vector.shape_cast %58 : vector<4x256xf32> to vector<1x4x256xf32>
    tpu.vector_store %arg8[%c0_51, %c0_52, %c0_53], %61 {strides = array<i32>} : memref<2x4x256xf32, #tpu.memory_space<vmem>>, vector<1x4x256xf32>,
    %cst_54 = arith.constant dense<0.000000e+00> : vector<4xf32>
    %62 = vector.multi_reduction <add>, %58, %cst_54 [1] : vector<4x256xf32> to vector<4xf32>
    %63 = vector.shape_cast %62 : vector<4xf32> to vector<4x1xf32>
    %64 = arith.mulf %58, %58 : vector<4x256xf32>
    %cst_55 = arith.constant dense<0.000000e+00> : vector<4xf32>
    %65 = vector.multi_reduction <add>, %64, %cst_55 [1] : vector<4x256xf32> to vector<4xf32>
    %66 = vector.shape_cast %65 : vector<4xf32> to vector<4x1xf32>
    %c1_56 = arith.constant 1 : index
    %c0_57 = arith.constant 0 : index
    %c0_58 = arith.constant 0 : index
    %67 = vector.load %arg1[%c1_56, %c0_57, %c0_58] : memref<2x5x290xbf16, #tpu.memory_space<vmem>>, vector<1x5x256xbf16>
    %68 = vector.shape_cast %67 : vector<1x5x256xbf16> to vector<5x256xbf16>
    %c0_59 = arith.constant 0 : index
    %c0_60 = arith.constant 0 : index
    %c0_61 = arith.constant 0 : index
    %69 = vector.load %arg2[%c0_59, %c0_60, %c0_61] : memref<9x4x5xbf16, #tpu.memory_space<vmem>>, vector<1x4x5xbf16>
    %70 = vector.shape_cast %69 : vector<1x4x5xbf16> to vector<4x5xbf16>
    %cst_62 = arith.constant dense<0.000000e+00> : vector<4x256xf32>
    %71 = tpu.matmul %70, %68, %cst_62 {dimension_numbers = #tpu.dot_dimension_numbers<[1], [0], [0], [1], [0, 0, 1, 1], [], []>} : vector<4x5xbf16>, vector<5x256xbf16>, vector<4x256xf32> -> vector<4x256xf32>
    %c1_63 = arith.constant 1 : index
    %c0_64 = arith.constant 0 : index
    %c1_65 = arith.constant 1 : index
    %72 = vector.load %arg1[%c1_63, %c0_64, %c1_65] : memref<2x5x290xbf16, #tpu.memory_space<vmem>>, vector<1x5x256xbf16>
    %73 = vector.shape_cast %72 : vector<1x5x256xbf16> to vector<5x256xbf16>
    %c1_66 = arith.constant 1 : index
    %c0_67 = arith.constant 0 : index
    %c0_68 = arith.constant 0 : index
    %74 = vector.load %arg2[%c1_66, %c0_67, %c0_68] : memref<9x4x5xbf16, #tpu.memory_space<vmem>>, vector<1x4x5xbf16>
    %75 = vector.shape_cast %74 : vector<1x4x5xbf16> to vector<4x5xbf16>
    %cst_69 = arith.constant dense<0.000000e+00> : vector<4x256xf32>
    %76 = tpu.matmul %75, %73, %cst_69 {dimension_numbers = #tpu.dot_dimension_numbers<[1], [0], [0], [1], [0, 0, 1, 1], [], []>} : vector<4x5xbf16>, vector<5x256xbf16>, vector<4x256xf32> -> vector<4x256xf32>
    %c1_70 = arith.constant 1 : index
    %c0_71 = arith.constant 0 : index
    %c2_72 = arith.constant 2 : index
    %77 = vector.load %arg1[%c1_70, %c0_71, %c2_72] : memref<2x5x290xbf16, #tpu.memory_space<vmem>>, vector<1x5x256xbf16>
    %78 = vector.shape_cast %77 : vector<1x5x256xbf16> to vector<5x256xbf16>
    %c2_73 = arith.constant 2 : index
    %c0_74 = arith.constant 0 : index
    %c0_75 = arith.constant 0 : index
    %79 = vector.load %arg2[%c2_73, %c0_74, %c0_75] : memref<9x4x5xbf16, #tpu.memory_space<vmem>>, vector<1x4x5xbf16>
    %80 = vector.shape_cast %79 : vector<1x4x5xbf16> to vector<4x5xbf16>
    %cst_76 = arith.constant dense<0.000000e+00> : vector<4x256xf32>
    %81 = tpu.matmul %80, %78, %cst_76 {dimension_numbers = #tpu.dot_dimension_numbers<[1], [0], [0], [1], [0, 0, 1, 1], [], []>} : vector<4x5xbf16>, vector<5x256xbf16>, vector<4x256xf32> -> vector<4x256xf32>
    %c1_77 = arith.constant 1 : index
    %c0_78 = arith.constant 0 : index
    %c16_79 = arith.constant 16 : index
    %82 = vector.load %arg1[%c1_77, %c0_78, %c16_79] : memref<2x5x290xbf16, #tpu.memory_space<vmem>>, vector<1x5x256xbf16>
    %83 = vector.shape_cast %82 : vector<1x5x256xbf16> to vector<5x256xbf16>
    %c3_80 = arith.constant 3 : index
    %c0_81 = arith.constant 0 : index
    %c0_82 = arith.constant 0 : index
    %84 = vector.load %arg2[%c3_80, %c0_81, %c0_82] : memref<9x4x5xbf16, #tpu.memory_space<vmem>>, vector<1x4x5xbf16>
    %85 = vector.shape_cast %84 : vector<1x4x5xbf16> to vector<4x5xbf16>
    %cst_83 = arith.constant dense<0.000000e+00> : vector<4x256xf32>
    %86 = tpu.matmul %85, %83, %cst_83 {dimension_numbers = #tpu.dot_dimension_numbers<[1], [0], [0], [1], [0, 0, 1, 1], [], []>} : vector<4x5xbf16>, vector<5x256xbf16>, vector<4x256xf32> -> vector<4x256xf32>
    %87 = arith.addf %71, %86 : vector<4x256xf32>
    %c1_84 = arith.constant 1 : index
    %c0_85 = arith.constant 0 : index
    %c17_86 = arith.constant 17 : index
    %88 = vector.load %arg1[%c1_84, %c0_85, %c17_86] : memref<2x5x290xbf16, #tpu.memory_space<vmem>>, vector<1x5x256xbf16>
    %89 = vector.shape_cast %88 : vector<1x5x256xbf16> to vector<5x256xbf16>
    %c4_87 = arith.constant 4 : index
    %c0_88 = arith.constant 0 : index
    %c0_89 = arith.constant 0 : index
    %90 = vector.load %arg2[%c4_87, %c0_88, %c0_89] : memref<9x4x5xbf16, #tpu.memory_space<vmem>>, vector<1x4x5xbf16>
    %91 = vector.shape_cast %90 : vector<1x4x5xbf16> to vector<4x5xbf16>
    %cst_90 = arith.constant dense<0.000000e+00> : vector<4x256xf32>
    %92 = tpu.matmul %91, %89, %cst_90 {dimension_numbers = #tpu.dot_dimension_numbers<[1], [0], [0], [1], [0, 0, 1, 1], [], []>} : vector<4x5xbf16>, vector<5x256xbf16>, vector<4x256xf32> -> vector<4x256xf32>
    %93 = arith.addf %76, %92 : vector<4x256xf32>
    %c1_91 = arith.constant 1 : index
    %c0_92 = arith.constant 0 : index
    %c18_93 = arith.constant 18 : index
    %94 = vector.load %arg1[%c1_91, %c0_92, %c18_93] : memref<2x5x290xbf16, #tpu.memory_space<vmem>>, vector<1x5x256xbf16>
    %95 = vector.shape_cast %94 : vector<1x5x256xbf16> to vector<5x256xbf16>
    %c5_94 = arith.constant 5 : index
    %c0_95 = arith.constant 0 : index
    %c0_96 = arith.constant 0 : index
    %96 = vector.load %arg2[%c5_94, %c0_95, %c0_96] : memref<9x4x5xbf16, #tpu.memory_space<vmem>>, vector<1x4x5xbf16>
    %97 = vector.shape_cast %96 : vector<1x4x5xbf16> to vector<4x5xbf16>
    %cst_97 = arith.constant dense<0.000000e+00> : vector<4x256xf32>
    %98 = tpu.matmul %97, %95, %cst_97 {dimension_numbers = #tpu.dot_dimension_numbers<[1], [0], [0], [1], [0, 0, 1, 1], [], []>} : vector<4x5xbf16>, vector<5x256xbf16>, vector<4x256xf32> -> vector<4x256xf32>
    %99 = arith.addf %81, %98 : vector<4x256xf32>
    %c1_98 = arith.constant 1 : index
    %c0_99 = arith.constant 0 : index
    %c32_100 = arith.constant 32 : index
    %100 = vector.load %arg1[%c1_98, %c0_99, %c32_100] : memref<2x5x290xbf16, #tpu.memory_space<vmem>>, vector<1x5x256xbf16>
    %101 = vector.shape_cast %100 : vector<1x5x256xbf16> to vector<5x256xbf16>
    %c6_101 = arith.constant 6 : index
    %c0_102 = arith.constant 0 : index
    %c0_103 = arith.constant 0 : index
    %102 = vector.load %arg2[%c6_101, %c0_102, %c0_103] : memref<9x4x5xbf16, #tpu.memory_space<vmem>>, vector<1x4x5xbf16>
    %103 = vector.shape_cast %102 : vector<1x4x5xbf16> to vector<4x5xbf16>
    %cst_104 = arith.constant dense<0.000000e+00> : vector<4x256xf32>
    %104 = tpu.matmul %103, %101, %cst_104 {dimension_numbers = #tpu.dot_dimension_numbers<[1], [0], [0], [1], [0, 0, 1, 1], [], []>} : vector<4x5xbf16>, vector<5x256xbf16>, vector<4x256xf32> -> vector<4x256xf32>
    %105 = arith.addf %87, %104 : vector<4x256xf32>
    %c1_105 = arith.constant 1 : index
    %c0_106 = arith.constant 0 : index
    %c33_107 = arith.constant 33 : index
    %106 = vector.load %arg1[%c1_105, %c0_106, %c33_107] : memref<2x5x290xbf16, #tpu.memory_space<vmem>>, vector<1x5x256xbf16>
    %107 = vector.shape_cast %106 : vector<1x5x256xbf16> to vector<5x256xbf16>
    %c7_108 = arith.constant 7 : index
    %c0_109 = arith.constant 0 : index
    %c0_110 = arith.constant 0 : index
    %108 = vector.load %arg2[%c7_108, %c0_109, %c0_110] : memref<9x4x5xbf16, #tpu.memory_space<vmem>>, vector<1x4x5xbf16>
    %109 = vector.shape_cast %108 : vector<1x4x5xbf16> to vector<4x5xbf16>
    %cst_111 = arith.constant dense<0.000000e+00> : vector<4x256xf32>
    %110 = tpu.matmul %109, %107, %cst_111 {dimension_numbers = #tpu.dot_dimension_numbers<[1], [0], [0], [1], [0, 0, 1, 1], [], []>} : vector<4x5xbf16>, vector<5x256xbf16>, vector<4x256xf32> -> vector<4x256xf32>
    %111 = arith.addf %93, %110 : vector<4x256xf32>
    %c1_112 = arith.constant 1 : index
    %c0_113 = arith.constant 0 : index
    %c34_114 = arith.constant 34 : index
    %112 = vector.load %arg1[%c1_112, %c0_113, %c34_114] : memref<2x5x290xbf16, #tpu.memory_space<vmem>>, vector<1x5x256xbf16>
    %113 = vector.shape_cast %112 : vector<1x5x256xbf16> to vector<5x256xbf16>
    %c8_115 = arith.constant 8 : index
    %c0_116 = arith.constant 0 : index
    %c0_117 = arith.constant 0 : index
    %114 = vector.load %arg2[%c8_115, %c0_116, %c0_117] : memref<9x4x5xbf16, #tpu.memory_space<vmem>>, vector<1x4x5xbf16>
    %115 = vector.shape_cast %114 : vector<1x4x5xbf16> to vector<4x5xbf16>
    %cst_118 = arith.constant dense<0.000000e+00> : vector<4x256xf32>
    %116 = tpu.matmul %115, %113, %cst_118 {dimension_numbers = #tpu.dot_dimension_numbers<[1], [0], [0], [1], [0, 0, 1, 1], [], []>} : vector<4x5xbf16>, vector<5x256xbf16>, vector<4x256xf32> -> vector<4x256xf32>
    %117 = arith.addf %99, %116 : vector<4x256xf32>
    %c0_119 = arith.constant 0 : index
    %c0_120 = arith.constant 0 : index
    %118 = vector.load %arg3[%c0_119, %c0_120] : memref<1x256xf32, #tpu.memory_space<vmem>>, vector<1x256xf32>
    %119 = vector.broadcast %118 : vector<1x256xf32> to vector<4x256xf32>
    %120 = arith.mulf %105, %119 : vector<4x256xf32>
    %121 = arith.addf %120, %111 : vector<4x256xf32>
    %c0_121 = arith.constant 0 : index
    %c0_122 = arith.constant 0 : index
    %122 = vector.load %arg4[%c0_121, %c0_122] : memref<1x256xf32, #tpu.memory_space<vmem>>, vector<1x256xf32>
    %123 = vector.broadcast %122 : vector<1x256xf32> to vector<4x256xf32>
    %124 = arith.mulf %117, %123 : vector<4x256xf32>
    %125 = arith.addf %121, %124 : vector<4x256xf32>
    %c1_123 = arith.constant 1 : index
    %c0_124 = arith.constant 0 : index
    %c0_125 = arith.constant 0 : index
    %126 = vector.load %arg8[%c1_123, %c0_124, %c0_125] : memref<2x4x256xf32, #tpu.memory_space<vmem>>, vector<1x4x256xf32>
    %127 = vector.shape_cast %126 : vector<1x4x256xf32> to vector<4x256xf32>
    %128 = vector.shape_cast %125 : vector<4x256xf32> to vector<1x4x256xf32>
    tpu.vector_store %arg8[%c1_123, %c0_124, %c0_125], %128 {strides = array<i32>} : memref<2x4x256xf32, #tpu.memory_space<vmem>>, vector<1x4x256xf32>,
    %cst_126 = arith.constant dense<0.000000e+00> : vector<4xf32>
    %129 = vector.multi_reduction <add>, %125, %cst_126 [1] : vector<4x256xf32> to vector<4xf32>
    %130 = vector.shape_cast %129 : vector<4xf32> to vector<4x1xf32>
    %131 = arith.mulf %125, %125 : vector<4x256xf32>
    %cst_127 = arith.constant dense<0.000000e+00> : vector<4xf32>
    %132 = vector.multi_reduction <add>, %131, %cst_127 [1] : vector<4x256xf32> to vector<4xf32>
    %133 = vector.shape_cast %132 : vector<4xf32> to vector<4x1xf32>
    %134 = arith.addf %63, %130 : vector<4x1xf32>
    %135 = arith.addf %66, %133 : vector<4x1xf32>
    %cst_128 = arith.constant 5.120000e+02 : f32
    %136 = vector.broadcast %cst_128 : f32 to vector<4x1xf32>
    %137 = arith.divf %134, %136 : vector<4x1xf32>
    %cst_129 = arith.constant 5.120000e+02 : f32
    %138 = vector.broadcast %cst_129 : f32 to vector<4x1xf32>
    %139 = arith.divf %135, %138 : vector<4x1xf32>
    %140 = arith.mulf %137, %137 : vector<4x1xf32>
    %141 = arith.subf %139, %140 : vector<4x1xf32>
    %cst_130 = arith.constant 0.000000e+00 : f32
    %142 = vector.broadcast %cst_130 : f32 to vector<4x1xf32>
    %143 = arith.maximumf %141, %142 : vector<4x1xf32>
    %c0_131 = arith.constant 0 : index
    %c0_132 = arith.constant 0 : index
    %144 = vector.load %arg5[%c0_131, %c0_132] : memref<4x1xf32, #tpu.memory_space<vmem>>, vector<4x1xf32>
    %cst_133 = arith.constant 9.99999974E-6 : f32
    %145 = vector.broadcast %cst_133 : f32 to vector<4x1xf32>
    %146 = arith.addf %143, %145 : vector<4x1xf32>
    %147 = math.rsqrt %146 : vector<4x1xf32>
    %148 = arith.mulf %144, %147 : vector<4x1xf32>
    %c0_134 = arith.constant 0 : index
    %c0_135 = arith.constant 0 : index
    %149 = vector.load %arg6[%c0_134, %c0_135] : memref<4x1xf32, #tpu.memory_space<vmem>>, vector<4x1xf32>
    %150 = arith.mulf %137, %148 : vector<4x1xf32>
    %151 = arith.subf %149, %150 : vector<4x1xf32>
    %c0_136 = arith.constant 0 : index
    %c0_137 = arith.constant 0 : index
    %c17_138 = arith.constant 17 : index
    %152 = vector.load %arg1[%c0_136, %c0_137, %c17_138] : memref<2x5x290xbf16, #tpu.memory_space<vmem>>, vector<1x4x256xbf16>
    %153 = vector.shape_cast %152 : vector<1x4x256xbf16> to vector<4x256xbf16>
    %154 = arith.extf %153 : vector<4x256xbf16> to vector<4x256xf32>
    %c0_139 = arith.constant 0 : index
    %c0_140 = arith.constant 0 : index
    %c0_141 = arith.constant 0 : index
    %155 = vector.load %arg8[%c0_139, %c0_140, %c0_141] : memref<2x4x256xf32, #tpu.memory_space<vmem>>, vector<1x4x256xf32>
    %156 = vector.shape_cast %155 : vector<1x4x256xf32> to vector<4x256xf32>
    %157 = vector.broadcast %148 : vector<4x1xf32> to vector<4x256xf32>
    %158 = arith.mulf %156, %157 : vector<4x256xf32>
    %159 = vector.broadcast %151 : vector<4x1xf32> to vector<4x256xf32>
    %160 = arith.addf %158, %159 : vector<4x256xf32>
    %161 = arith.addf %160, %154 : vector<4x256xf32>
    %c0_142 = arith.constant 0 : index
    %c0_143 = arith.constant 0 : index
    %c0_144 = arith.constant 0 : index
    %162 = vector.load %arg7[%c0_142, %c0_143, %c0_144] : memref<2x4x256xf32, #tpu.memory_space<vmem>>, vector<1x4x256xf32>
    %163 = vector.shape_cast %162 : vector<1x4x256xf32> to vector<4x256xf32>
    %164 = vector.shape_cast %161 : vector<4x256xf32> to vector<1x4x256xf32>
    tpu.vector_store %arg7[%c0_142, %c0_143, %c0_144], %164 {strides = array<i32>} : memref<2x4x256xf32, #tpu.memory_space<vmem>>, vector<1x4x256xf32>,
    %c1_145 = arith.constant 1 : index
    %c0_146 = arith.constant 0 : index
    %c17_147 = arith.constant 17 : index
    %165 = vector.load %arg1[%c1_145, %c0_146, %c17_147] : memref<2x5x290xbf16, #tpu.memory_space<vmem>>, vector<1x4x256xbf16>
    %166 = vector.shape_cast %165 : vector<1x4x256xbf16> to vector<4x256xbf16>
    %167 = arith.extf %166 : vector<4x256xbf16> to vector<4x256xf32>
    %c1_148 = arith.constant 1 : index
    %c0_149 = arith.constant 0 : index
    %c0_150 = arith.constant 0 : index
    %168 = vector.load %arg8[%c1_148, %c0_149, %c0_150] : memref<2x4x256xf32, #tpu.memory_space<vmem>>, vector<1x4x256xf32>
    %169 = vector.shape_cast %168 : vector<1x4x256xf32> to vector<4x256xf32>
    %170 = vector.broadcast %148 : vector<4x1xf32> to vector<4x256xf32>
    %171 = arith.mulf %169, %170 : vector<4x256xf32>
    %172 = vector.broadcast %151 : vector<4x1xf32> to vector<4x256xf32>
    %173 = arith.addf %171, %172 : vector<4x256xf32>
    %174 = arith.addf %173, %167 : vector<4x256xf32>
    %c1_151 = arith.constant 1 : index
    %c0_152 = arith.constant 0 : index
    %c0_153 = arith.constant 0 : index
    %175 = vector.load %arg7[%c1_151, %c0_152, %c0_153] : memref<2x4x256xf32, #tpu.memory_space<vmem>>, vector<1x4x256xf32>
    %176 = vector.shape_cast %175 : vector<1x4x256xf32> to vector<4x256xf32>
    %177 = vector.shape_cast %174 : vector<4x256xf32> to vector<1x4x256xf32>
    tpu.vector_store %arg7[%c1_151, %c0_152, %c0_153], %177 {strides = array<i32>} : memref<2x4x256xf32, #tpu.memory_space<vmem>>, vector<1x4x256xf32>,
    return
  }
  func.func @transform_0(%arg0: i32) -> (i32, i32, i32) {
    %c0_i32 = arith.constant 0 : i32
    %c0_i32_0 = arith.constant 0 : i32
    %c0_i32_1 = arith.constant 0 : i32
    %c0_i32_2 = arith.constant 0 : i32
    return %c0_i32, %c0_i32_0, %c0_i32_1 : i32, i32, i32
  }
  func.func @transform_1(%arg0: i32) -> (i32, i32, i32) {
    %c0_i32 = arith.constant 0 : i32
    %c0_i32_0 = arith.constant 0 : i32
    %c0_i32_1 = arith.constant 0 : i32
    %c0_i32_2 = arith.constant 0 : i32
    return %c0_i32, %c0_i32_0, %c0_i32_1 : i32, i32, i32
  }
  func.func @transform_2(%arg0: i32) -> (i32, i32) {
    %c0_i32 = arith.constant 0 : i32
    %c0_i32_0 = arith.constant 0 : i32
    %c0_i32_1 = arith.constant 0 : i32
    return %c0_i32, %c0_i32_0 : i32, i32
  }
  func.func @transform_3(%arg0: i32) -> (i32, i32) {
    %c0_i32 = arith.constant 0 : i32
    %c0_i32_0 = arith.constant 0 : i32
    %c0_i32_1 = arith.constant 0 : i32
    return %c0_i32, %c0_i32_0 : i32, i32
  }
  func.func @transform_4(%arg0: i32) -> (i32, i32) {
    %c0_i32 = arith.constant 0 : i32
    %c0_i32_0 = arith.constant 0 : i32
    %c0_i32_1 = arith.constant 0 : i32
    return %c0_i32, %c0_i32_0 : i32, i32
  }
  func.func @transform_5(%arg0: i32) -> (i32, i32) {
    %c0_i32 = arith.constant 0 : i32
    %c0_i32_0 = arith.constant 0 : i32
    %c0_i32_1 = arith.constant 0 : i32
    return %c0_i32, %c0_i32_0 : i32, i32
  }
  func.func @transform_6(%arg0: i32) -> (i32, i32, i32) {
    %c0_i32 = arith.constant 0 : i32
    %c0_i32_0 = arith.constant 0 : i32
    %c0_i32_1 = arith.constant 0 : i32
    %c0_i32_2 = arith.constant 0 : i32
    return %c0_i32, %c0_i32_0, %c0_i32_1 : i32, i32, i32
  }
}

</mosaic_0001>

<bundles_post_ra>
// kernel: conv_bn_residual_forward.1
= control target key start
LH: loop header
LB: loop body
LE: loop exit
PB: predicated region body
PF: predicated region fallthrough
CT: control target
= control target key end

     0   :  { %s1423_s23 = smov 112   ;;  %v1424_v4 = vmov 0   ;;  %s1425_s26 = smov 127   ;;  %vm54_vm0 = vcmask 1041408   ;;  %vm47_vm1 = vcmask 916480   ;;  %vm55_vm2 = vcmask 1042432   ;;  %s1802_s0 = inlined_call_operand.vmem [shape: bf16[2,5,290], index: 0, kind: input, shape index: {}]   ;;  %s1803_s1 = inlined_call_operand.vmem [shape: bf16[9,4,5], index: 1, kind: input, shape index: {}]   ;;  %s1804_s2 = inlined_call_operand.vmem [shape: f32[1,256], index: 2, kind: input, shape index: {}]   ;;  %s1805_s3 = inlined_call_operand.vmem [shape: f32[1,256], index: 3, kind: input, shape index: {}]   ;;  %s1806_s4 = inlined_call_operand.vmem [shape: f32[4,1], index: 4, kind: input, shape index: {}]   ;;  %s1807_s5 = inlined_call_operand.vmem [shape: f32[4,1], index: 5, kind: input, shape index: {}]   ;;  %s1808_s6 = inlined_call_operand.vmem [shape: f32[2,4,256], index: 6, kind: output, shape index: {}]  }
   0x1   :  { %v24_v0 = vld [vmem:[%s1802_s0] sm:$0x77]  ;;  %v1417_v3 = vld [vmem:[%s1802_s0 + $0x8] ss:$0 sps:$4 sm:$0x77]   ;;  %96 = vmatprep.mubr.bf16.mxu0 %v1424_v4  ;;  %266 = vmatprep.mubr.bf16.mxu1 %v1424_v4  ;;  %s1426_s29 = smov 95  }
   0x2   :  { %v1472_v1 = vcombine.high %v24_v0, %v24_v0  ;;  %v1474_v2 = vcombine.low %v24_v0, %v24_v0  ;;  %1403 = vset.pattern.permute.xlu1 %v1424_v4  ;;  %1404 = vset.pattern.permute.xlu0 %v1424_v4  ;;  %v1335_v5 = vld [vmem:[%s1802_s0 + $0xc] sm:$0x77]  ;;  %v1419_v7 = vld [vmem:[%s1802_s0 + $0x14] ss:$0 sps:$4 sm:$0x77]   ;;  %s1427_s8 = smov 111  }
   0x3   :  { %v1496_v6 = vcombine.high %v1335_v5, %v1335_v5  ;;  %v1504_v8 = vcombine.low %v1335_v5, %v1335_v5  ;;  %s1428_s9 = smov 110   ;;  %s1429_s10 = smov 126   ;;  %v1432_v11 = vmov 65535   ;;  %vm222_vm3 = vcmask 1039360   ;;  %v1317_v25 = vld [vmem:[%s1803_s1 + $0x6] sm:$0x3] }
   0x4   :  { %43 = vrot.lane.b32.xlu0 %v1472_v1, %s1423_s23  ;;  %41 = vrot.lane.b32.xlu1 %v1474_v2, %s1423_s23  ;;  %s1430_s11 = smov 96   ;;  %s1431_s12 = smov 94   ;;  %v56_v12 = vsel %vm54_vm0, 4294967295, %v1432_v11  ;;  %vm50_vm4 = vcmask 39936   ;;  %vm466_vm5 = vcmask 777216   ;;  %vm163_vm6 = vcmask 908288  }
   0x5   :  { %v1544_v16 = vsel %vm55_vm2, %v56_v12, 0  ;;  %v1315_v32 = vld [vmem:[%s1803_s1 + $0x2] sm:$0x3]  ;;  %v1331_v42 = vld [vmem:[%s1803_s1 + $0xe] sm:$0x3]  ;;  %vm283_vm7 = vcmask 900096  }
   0x6   :  { %v112_v19 = vand.u32 %v1472_v1, %v1544_v16  ;;  %v109_v26 = vand.u32 %v1474_v2, %v1544_v16  ;;  %v25_v45 = vld [vmem:[%s1803_s1] sm:$0x3]  ;;  %v714_v46 = vand.u32 %v1496_v6, %v1544_v16  ;;  %v1339_v54 = vld [vmem:[%s1803_s1 + $0x6] sm:$0x3]  ;;  %v711_v55 = vand.u32 %v1504_v8, %v1544_v16  ;;  %v1323_v59 = vld [vmem:[%s1803_s1 + $0x8] sm:$0x3] }
   0x7   :  { %vm342_vm8 = vcmask 1031168   ;;  %vm403_vm9 = vcmask 785408   ;;  %vm529_vm10 = vcmask 769024   ;;  %vm621_vm11 = vcmask 1043456  }
   0x8   :  { %45 = vrot.lane.b32.xlu0 %v1417_v3, %s1423_s23  ;;  %218 = vrot.lane.b32.xlu1 %v1472_v1, %s1425_s26 }
   0xc   :  { %220 = vrot.lane.b32.xlu0 %v1417_v3, %s1425_s26  ;;  %216 = vrot.lane.b32.xlu1 %v1474_v2, %s1425_s26 }
  0x10   :  { %462 = vrot.lane.b32.xlu0 %v1472_v1, %s1426_s29  ;;  %464 = vrot.lane.b32.xlu1 %v1417_v3, %s1426_s29 }
  0x14   :  { %460 = vrot.lane.b32.xlu0 %v1474_v2, %s1426_s29  ;;  %651 = vrot.lane.b32.xlu1 %v1496_v6, %s1423_s23 }
  0x18   :  { %653 = vrot.lane.b32.xlu0 %v1419_v7, %s1423_s23  ;;  %649 = vrot.lane.b32.xlu1 %v1504_v8, %s1423_s23 }
  0x1c   :  { %159 = vrot.lane.b32.xlu0 %v1472_v1, %s1427_s8  ;;  %161 = vrot.lane.b32.xlu1 %v1417_v3, %s1427_s8 }
  0x20   :  { %157 = vrot.lane.b32.xlu0 %v1474_v2, %s1427_s8  ;;  %279 = vrot.lane.b32.xlu1 %v1472_v1, %s1428_s9 }
  0x24   :  { %281 = vrot.lane.b32.xlu0 %v1417_v3, %s1428_s9  ;;  %277 = vrot.lane.b32.xlu1 %v1474_v2, %s1428_s9 }
  0x28   :  { %760 = vrot.lane.b32.xlu0 %v1496_v6, %s1427_s8  ;;  %762 = vrot.lane.b32.xlu1 %v1419_v7, %s1427_s8 }
  0x2c   :  { %758 = vrot.lane.b32.xlu0 %v1504_v8, %s1427_s8  ;;  %338 = vrot.lane.b32.xlu1 %v1472_v1, %s1429_s10 }
  0x30   :  { %340 = vrot.lane.b32.xlu0 %v1417_v3, %s1429_s10  ;;  %336 = vrot.lane.b32.xlu1 %v1474_v2, %s1429_s10 }
  0x34   :  { %877 = vrot.lane.b32.xlu0 %v1496_v6, %s1428_s9  ;;  %879 = vrot.lane.b32.xlu1 %v1419_v7, %s1428_s9 }
  0x38   :  { %875 = vrot.lane.b32.xlu0 %v1504_v8, %s1428_s9  ;;  %399 = vrot.lane.b32.xlu1 %v1472_v1, %s1430_s11 }
  0x3c   :  { %401 = vrot.lane.b32.xlu0 %v1417_v3, %s1430_s11  ;;  %397 = vrot.lane.b32.xlu1 %v1474_v2, %s1430_s11 }
  0x40   :  { %525 = vrot.lane.b32.xlu0 %v1472_v1, %s1431_s12  ;;  %527 = vrot.lane.b32.xlu1 %v1417_v3, %s1431_s12 }
  0x44   :  { %523 = vrot.lane.b32.xlu0 %v1474_v2, %s1431_s12  ;;  %935 = vrot.lane.b32.xlu1 %v1496_v6, %s1429_s10 }
  0x48   :  { %937 = vrot.lane.b32.xlu0 %v1419_v7, %s1429_s10  ;;  %933 = vrot.lane.b32.xlu1 %v1504_v8, %s1429_s10 }
  0x4c   :  { %818 = vrot.lane.b32.xlu0 %v1496_v6, %s1425_s26  ;;  %820 = vrot.lane.b32.xlu1 %v1419_v7, %s1425_s26 }
  0x50   :  { %816 = vrot.lane.b32.xlu0 %v1504_v8, %s1425_s26  ;;  %994 = vrot.lane.b32.xlu1 %v1496_v6, %s1430_s11 }
  0x54   :  { %996 = vrot.lane.b32.xlu0 %v1419_v7, %s1430_s11  ;;  %992 = vrot.lane.b32.xlu1 %v1504_v8, %s1430_s11 }
  0x58   :  { %1055 = vrot.lane.b32.xlu0 %v1496_v6, %s1426_s29  ;;  %1057 = vrot.lane.b32.xlu1 %v1419_v7, %s1426_s29 }
  0x5c   :  { %1053 = vrot.lane.b32.xlu0 %v1504_v8, %s1426_s29  ;;  %1116 = vrot.lane.b32.xlu1 %v1496_v6, %s1431_s12 }
  0x60   :  { %1118 = vrot.lane.b32.xlu0 %v1419_v7, %s1431_s12  ;;  %1114 = vrot.lane.b32.xlu1 %v1504_v8, %s1431_s12  ;;  %v1326_v7 = vld [vmem:[%s1803_s1 + $0xa] sm:$0x3] }
  0x76   :  { %v44_v9 = vpop.permute.xlu0 %43  ;;  %v42_v10 = vpop.permute.xlu1 %41 }
  0x77   :  { %v48_v13 = vsel %vm47_vm1, %v42_v10, %v44_v9 }
  0x78   :  { %v59_v20 = vand.u32 %v1544_v16, %v48_v13 }
  0x7a   :  { %v46_v14 = vpop.permute.xlu0 %45  ;;  %v219_v15 = vpop.permute.xlu1 %218 }
  0x7b   :  { %v49_v17 = vsel %vm47_vm1, %v44_v9, %v46_v14  ;;  %v636_v9 = vld [vmem:[%s1803_s1] sm:$0x3] }
  0x7c   :  { %v62_v18 = vand.u32 %v1544_v16, %v49_v17 }
  0x7e   :  { %64 = vmatprep.subr.bf16.mxu0 %v62_v18  ;;  %v221_v21 = vpop.permute.xlu0 %220  ;;  %v217_v22 = vpop.permute.xlu1 %216 }
  0x7f   :  { %v223_v23 = vsel %vm222_vm3, %v217_v22, %v219_v15  ;;  %65 = vmatpush1.bf16.msra.mxu0 %v59_v20  ;;  %v224_v24 = vsel %vm222_vm3, %v219_v15, %v221_v21  ;;  %v1345_v21 = vld [vmem:[%s1803_s1 + $0x8] sm:$0x3] }
  0x80   :  { %v232_v27 = vand.u32 %v224_v24, %v1544_v16  ;;  %v229_v28 = vand.u32 %v223_v23, %v1544_v16  ;;  %114 = vmatprep.subr.bf16.mxu0 %v112_v19 }
  0x82   :  { %v463_v29 = vpop.permute.xlu0 %462  ;;  %234 = vmatprep.subr.bf16.mxu1 %v232_v27  ;;  %v465_v30 = vpop.permute.xlu1 %464  ;;  %1321 = vmatmul.mubr.msk.bf16.vlgmr.msra.gmra.mrb[0].mxu0 %vm50_vm4, %v1317_v25  ;;  %v1316_v25 = vld [vmem:[%s1803_s1 + $0x4] sm:$0x3] }
  0x83   :  { %v468_v31 = vsel %vm466_vm5, %v463_v29, %v465_v30  ;;  %235 = vmatpush1.bf16.msra.mxu1 %v229_v28  ;;  %115 = vmatpush1.bf16.msra.mxu0 %v109_v26 }
  0x84   :  { %v476_v33 = vand.u32 %v468_v31, %v1544_v16  ;;  %146 = vmatprep.mubr.bf16.mxu0 %v1424_v4 }
  0x86   :  { %v461_v34 = vpop.permute.xlu0 %460  ;;  %1325 = vmatmul.mubr.msk.bf16.vlgmr.msra.gmra.mrb[0].mxu1 %vm50_vm4, %v1315_v32  ;;  %478 = vmatprep.subr.bf16.mxu1 %v476_v33  ;;  %v652_v35 = vpop.permute.xlu1 %651  ;;  %v1348_v32 = vld [vmem:[%s1803_s1 + $0xa] sm:$0x3] }
  0x87   :  { %v467_v36 = vsel %vm466_vm5, %v461_v34, %v463_v29  ;;  %510 = vmatprep.mubr.bf16.mxu1 %v1424_v4 }
  0x88   :  { %v473_v37 = vand.u32 %v467_v36, %v1544_v16 }
  0x8a   :  { %v654_v38 = vpop.permute.xlu0 %653  ;;  %479 = vmatpush1.bf16.msra.mxu1 %v473_v37  ;;  %v650_v39 = vpop.permute.xlu1 %649 }
  0x8b   :  { %v656_v40 = vsel %vm47_vm1, %v652_v35, %v654_v38  ;;  %v655_v41 = vsel %vm47_vm1, %v650_v39, %v652_v35  ;;  %v1329_v38 = vld [vmem:[%s1803_s1 + $0xc] sm:$0x3] }
  0x8c   :  { %v664_v43 = vand.u32 %v656_v40, %v1544_v16  ;;  %v661_v44 = vand.u32 %v655_v41, %v1544_v16 }
  0x8e   :  { %v160_v47 = vpop.permute.xlu0 %159  ;;  %1332 = vmatmul.mubr.msk.bf16.vlgmr.msra.gmra.mrb[4].mxu1 %vm50_vm4, %v1331_v42  ;;  %666 = vmatprep.subr.bf16.mxu1 %v664_v43  ;;  %v162_v48 = vpop.permute.xlu1 %161 }
  0x8f   :  { %v165_v49 = vsel %vm163_vm6, %v160_v47, %v162_v48  ;;  %667 = vmatpush1.bf16.msra.mxu1 %v661_v44  ;;  %1322 = vmatmul.mubr.msk.bf16.vlgmr.msra.gmra.mrb[0].mxu0 %vm50_vm4, %v25_v45  ;;  %v1333_v48 = vld [vmem:[%s1803_s1 + $0x10] sm:$0x3] }
  0x90   :  { %v173_v50 = vand.u32 %v165_v49, %v1544_v16  ;;  %698 = vmatprep.mubr.bf16.mxu1 %v1424_v4  ;;  %207 = vmatprep.mubr.bf16.mxu0 %v1424_v4 }
  0x91   :  { %716 = vmatprep.subr.bf16.mxu1 %v714_v46 }
  0x92   :  { %v158_v51 = vpop.permute.xlu0 %157  ;;  %v280_v52 = vpop.permute.xlu1 %279  ;;  %175 = vmatprep.subr.bf16.mxu0 %v173_v50 }
  0x93   :  { %v164_v53 = vsel %vm163_vm6, %v158_v51, %v160_v47 }
  0x94   :  { %v170_v56 = vand.u32 %v164_v53, %v1544_v16 }
  0x96   :  { %v282_v57 = vpop.permute.xlu0 %281  ;;  %1343 = vmatmul.mubr.msk.bf16.vlgmr.msra.gmra.mrb[8].mxu1 %vm50_vm4, %v1339_v54  ;;  %v278_v58 = vpop.permute.xlu1 %277  ;;  %176 = vmatpush1.bf16.msra.mxu0 %v170_v56  ;;  %v1338_v54 = vld [vmem:[%s1803_s1 + $0x4] sm:$0x3] }
  0x97   :  { %v285_v60 = vsel %vm283_vm7, %v280_v52, %v282_v57  ;;  %v284_v61 = vsel %vm283_vm7, %v278_v58, %v280_v52  ;;  %717 = vmatpush1.bf16.msra.mxu1 %v711_v55  ;;  %748 = vmatprep.mubr.bf16.mxu1 %v1424_v4 }
  0x98   :  { %v293_v62 = vand.u32 %v285_v60, %v1544_v16  ;;  %v290_v63 = vand.u32 %v284_v61, %v1544_v16 }
  0x99   :  { %1324 = vmatmul.mubr.msk.bf16.vlgmr.msra.gmra.mrb[4].mxu0 %vm50_vm4, %v1323_v59 }
  0x9a   :  { %v761_v0 = vpop.permute.xlu0 %760  ;;  %v763_v1 = vpop.permute.xlu1 %762  ;;  %295 = vmatprep.subr.bf16.mxu0 %v293_v62  ;;  %327 = vmatprep.mubr.bf16.mxu0 %v1424_v4  ;;  %v1337_v62 = vld [vmem:[%s1803_s1 + $0x2] sm:$0x3] }
  0x9b   :  { %v765_v2 = vsel %vm163_vm6, %v761_v0, %v763_v1  ;;  %296 = vmatpush1.bf16.msra.mxu0 %v290_v63 }
  0x9c   :  { %v773_v3 = vand.u32 %v765_v2, %v1544_v16 }
  0x9e   :  { %v759_v5 = vpop.permute.xlu0 %758  ;;  %775 = vmatprep.subr.bf16.mxu1 %v773_v3  ;;  %v339_v6 = vpop.permute.xlu1 %338 }
  0x9f   :  { %v764_v8 = vsel %vm163_vm6, %v759_v5, %v761_v0 }
  0xa0   :  { %v770_v10 = vand.u32 %v764_v8, %v1544_v16 }
  0xa1   :  { %1327 = vmatmul.mubr.msk.bf16.vlgmr.msra.gmra.mrb[8].mxu0 %vm50_vm4, %v1326_v7  ;;  %v1351_v7 = vld [vmem:[%s1803_s1 + $0xc] sm:$0x3] }
  0xa2   :  { %v341_v11 = vpop.permute.xlu0 %340  ;;  %1344 = vmatmul.mubr.msk.bf16.vlgmr.msra.gmra.mrb[8].mxu1 %vm50_vm4, %v636_v9  ;;  %v337_v12 = vpop.permute.xlu1 %336  ;;  %386 = vmatprep.mubr.bf16.mxu0 %v1424_v4 }
  0xa3   :  { %v344_v13 = vsel %vm342_vm8, %v339_v6, %v341_v11  ;;  %776 = vmatpush1.bf16.msra.mxu1 %v770_v10  ;;  %v343_v14 = vsel %vm342_vm8, %v337_v12, %v339_v6  ;;  %807 = vmatprep.mubr.bf16.mxu1 %v1424_v4 }
  0xa4   :  { %v352_v15 = vand.u32 %v344_v13, %v1544_v16  ;;  %v349_v17 = vand.u32 %v343_v14, %v1544_v16 }
  0xa6   :  { %v878_v18 = vpop.permute.xlu0 %877  ;;  %v880_v19 = vpop.permute.xlu1 %879  ;;  %354 = vmatprep.subr.bf16.mxu0 %v352_v15  ;;  %v1353_v15 = vld [vmem:[%s1803_s1 + $0xe] sm:$0x3] }
  0xa7   :  { %v882_v20 = vsel %vm283_vm7, %v878_v18, %v880_v19  ;;  %355 = vmatpush1.bf16.msra.mxu0 %v349_v17 }
  0xa8   :  { %v890_v22 = vand.u32 %v882_v20, %v1544_v16 }
  0xaa   :  { %v876_v23 = vpop.permute.xlu0 %875  ;;  %892 = vmatprep.subr.bf16.mxu1 %v890_v22  ;;  %v400_v24 = vpop.permute.xlu1 %399  ;;  %1346 = vmatmul.mubr.msk.bf16.vlgmr.msra.gmra.mrb[12].mxu1 %vm50_vm4, %v1345_v21 }
  0xab   :  { %v881_v26 = vsel %vm283_vm7, %v876_v23, %v878_v18  ;;  %924 = vmatprep.mubr.bf16.mxu1 %v1424_v4 }
  0xac   :  { %v887_v27 = vand.u32 %v881_v26, %v1544_v16 }
  0xad   :  { %1328 = vmatmul.mubr.msk.bf16.vlgmr.msra.gmra.mrb[8].mxu0 %vm50_vm4, %v1316_v25 }
  0xae   :  { %v402_v28 = vpop.permute.xlu0 %401  ;;  %893 = vmatpush1.bf16.msra.mxu1 %v887_v27  ;;  %v398_v29 = vpop.permute.xlu1 %397  ;;  %447 = vmatprep.mubr.bf16.mxu0 %v1424_v4 }
  0xaf   :  { %v405_v30 = vsel %vm403_vm9, %v400_v24, %v402_v28  ;;  %v404_v31 = vsel %vm403_vm9, %v398_v29, %v400_v24 }
  0xb0   :  { %v413_v33 = vand.u32 %v405_v30, %v1544_v16  ;;  %v410_v34 = vand.u32 %v404_v31, %v1544_v16 }
  0xb2   :  { %v526_v35 = vpop.permute.xlu0 %525  ;;  %v528_v36 = vpop.permute.xlu1 %527  ;;  %415 = vmatprep.subr.bf16.mxu0 %v413_v33  ;;  %1349 = vmatmul.mubr.msk.bf16.vlgmr.msra.gmra.mrb[16].mxu1 %vm50_vm4, %v1348_v32 }
  0xb3   :  { %v531_v37 = vsel %vm529_vm10, %v526_v35, %v528_v36  ;;  %416 = vmatpush1.bf16.msra.mxu0 %v410_v34  ;;  %982 = vmatprep.mubr.bf16.mxu1 %v1424_v4  ;;  %v586_v36 = vlaneseq }
  0xb4   :  { %v539_v39 = vand.u32 %v531_v37, %v1544_v16 }
  0xb6   :  { %v524_v40 = vpop.permute.xlu0 %523  ;;  %v936_v41 = vpop.permute.xlu1 %935  ;;  %1330 = vmatmul.mubr.msk.bf16.vlgmr.msra.gmra.mrb[0].mxu0 %vm50_vm4, %v1329_v38  ;;  %541 = vmatprep.subr.bf16.mxu0 %v539_v39  ;;  %v1705_v38 = vshrl.u32 %v586_v36, 7 }
  0xb7   :  { %v530_v42 = vsel %vm529_vm10, %v524_v40, %v526_v35  ;;  %573 = vmatprep.mubr.bf16.mxu0 %v1424_v4 }
  0xb8   :  { %v536_v43 = vand.u32 %v530_v42, %v1544_v16  ;;  %v1708_v42 = vsub.s32 0, %v1705_v38 }
  0xba   :  { %v938_v44 = vpop.permute.xlu0 %937  ;;  %v934_v45 = vpop.permute.xlu1 %933  ;;  %542 = vmatpush1.bf16.msra.mxu0 %v536_v43  ;;  %v584_v43 = vld [vmem:[%s1804_s2] sm:$0x3] }
  0xbb   :  { %v940_v46 = vsel %vm342_vm8, %v936_v41, %v938_v44  ;;  %v939_v47 = vsel %vm342_vm8, %v934_v45, %v936_v41  ;;  %v1714_v44 = vsub.s32 1, %v1705_v38  ;;  %v589_v45 = vrot.slane %v584_v43, %v1708_v42 }
  0xbc   :  { %v948_v49 = vand.u32 %v940_v46, %v1544_v16  ;;  %v945_v50 = vand.u32 %v939_v47, %v1544_v16 }
  0xbd   :  { %v593_v46 = vrot.slane %v584_v43, %v1714_v44 }
  0xbe   :  { %v819_v51 = vpop.permute.xlu0 %818  ;;  %950 = vmatprep.subr.bf16.mxu1 %v948_v49  ;;  %v821_v52 = vpop.permute.xlu1 %820  ;;  %1334 = vmatmul.mubr.msk.bf16.vlgmr.msra.gmra.mrb[8].mxu0 %vm50_vm4, %v1333_v48 }
  0xbf   :  { %v823_v53 = vsel %vm222_vm3, %v819_v51, %v821_v52  ;;  %951 = vmatpush1.bf16.msra.mxu1 %v945_v50  ;;  %865 = vmatprep.mubr.bf16.mxu0 %v1424_v4  ;;  %v600_v52 = vld [vmem:[%s1805_s3] sm:$0x3] }
  0xc0   :  { %v831_v55 = vand.u32 %v823_v53, %v1544_v16 }
  0xc2   :  { %v817_v56 = vpop.permute.xlu0 %816  ;;  %v995_v57 = vpop.permute.xlu1 %994  ;;  %833 = vmatprep.subr.bf16.mxu0 %v831_v55  ;;  %1350 = vmatmul.mubr.msk.bf16.vlgmr.msra.gmra.mrb[16].mxu1 %vm50_vm4, %v1338_v54 }
  0xc3   :  { %v822_v58 = vsel %vm222_vm3, %v817_v56, %v819_v51  ;;  %1041 = vmatprep.mubr.bf16.mxu1 %v1424_v4  ;;  %v605_v56 = vrot.slane %v600_v52, %v1708_v42 }
  0xc4   :  { %v828_v59 = vand.u32 %v822_v58, %v1544_v16 }
  0xc6   :  { %v997_v60 = vpop.permute.xlu0 %996  ;;  %v993_v61 = vpop.permute.xlu1 %992  ;;  %834 = vmatpush1.bf16.msra.mxu0 %v828_v59 }
  0xc7   :  { %v999_v63 = vsel %vm403_vm9, %v995_v57, %v997_v60  ;;  %v998_v0 = vsel %vm403_vm9, %v993_v61, %v995_v57  ;;  %v609_v57 = vrot.slane %v600_v52, %v1714_v44 }
  0xc8   :  { %v1007_v1 = vand.u32 %v999_v63, %v1544_v16  ;;  %v1004_v2 = vand.u32 %v998_v0, %v1544_v16 }
  0xc9   :  { %1347 = vmatmul.mubr.msk.bf16.vlgmr.msra.gmra.mrb[12].mxu0 %vm50_vm4, %v1337_v62 }
  0xca   :  { %v1056_v3 = vpop.permute.xlu0 %1055  ;;  %1009 = vmatprep.subr.bf16.mxu1 %v1007_v1  ;;  %v1058_v5 = vpop.permute.xlu1 %1057  ;;  %1102 = vmatprep.mubr.bf16.mxu0 %v1424_v4 }
  0xcb   :  { %v1060_v6 = vsel %vm466_vm5, %v1056_v3, %v1058_v5  ;;  %1010 = vmatpush1.bf16.msra.mxu1 %v1004_v2 }
  0xcc   :  { %v1068_v8 = vand.u32 %v1060_v6, %v1544_v16 }
  0xce   :  { %v1054_v9 = vpop.permute.xlu0 %1053  ;;  %1352 = vmatmul.mubr.msk.bf16.vlgmr.msra.gmra.mrb[8].mxu1 %vm50_vm4, %v1351_v7  ;;  %v1117_v10 = vpop.permute.xlu1 %1116  ;;  %1070 = vmatprep.subr.bf16.mxu0 %v1068_v8 }
  0xcf   :  { %v1059_v11 = vsel %vm466_vm5, %v1054_v9, %v1056_v3  ;;  %1163 = vmatprep.mubr.bf16.mxu1 %v1424_v4  ;;  %v1355_v4 = vld [vmem:[%s1803_s1 + $0x10] sm:$0x3] }
  0xd0   :  { %v1065_v12 = vand.u32 %v1059_v11, %v1544_v16 }
  0xd2   :  { %v1119_v13 = vpop.permute.xlu0 %1118  ;;  %v1115_v14 = vpop.permute.xlu1 %1114  ;;  %1071 = vmatpush1.bf16.msra.mxu0 %v1065_v12 }
  0xd3   :  { %v1121_v17 = vsel %vm529_vm10, %v1117_v10, %v1119_v13  ;;  %v1120_v18 = vsel %vm529_vm10, %v1115_v14, %v1117_v10 }
  0xd4   :  { %v1129_v19 = vand.u32 %v1121_v17, %v1544_v16  ;;  %v1126_v20 = vand.u32 %v1120_v18, %v1544_v16 }
  0xd5   :  { %1354 = vmatmul.mubr.msk.bf16.vlgmr.msra.gmra.mrb[16].mxu0 %vm50_vm4, %v1353_v15 }
  0xd6   :  { %1131 = vmatprep.subr.bf16.mxu1 %v1129_v19 }
  0xd7   :  { %1132 = vmatpush1.bf16.msra.mxu1 %v1126_v20  ;;  %v1174_v20 = vld [vmem:[%s1804_s2] sm:$0x3] }
  0xda   :  { %1356 = vmatmul.mubr.msk.bf16.vlgmr.msra.gmra.mrb[16].mxu1 %vm50_vm4, %v1355_v4 }
 0x159   :  { %v268_v21 = vpop.f32.mrb[0].mxu1 }
 0x15a   :  { %v270_v22 = vpop.f32.mrb[1].mxu1 }
 0x15b   :  { %v272_v23 = vpop.f32.mrb[2].mxu1 }
 0x15c   :  { %v273_v24 = vpop.f32.mrb[3].mxu1  ;;  %v1179_v23 = vrot.slane %v1174_v20, %v1708_v42 }
 0x15d   :  { %v1183_v24 = vrot.slane %v1174_v20, %v1714_v44 }
 0x161   :  { %v512_v25 = vpop.f32.mrb[4].mxu1 }
 0x162   :  { %v514_v26 = vpop.f32.mrb[5].mxu1 }
 0x163   :  { %v516_v27 = vpop.f32.mrb[6].mxu1 }
 0x164   :  { %v517_v28 = vpop.f32.mrb[7].mxu1 }
 0x16c   :  { %v209_v29 = vpop.f32.mrb[4].mxu0 }
 0x16d   :  { %v269_v16 = vadd.f32 %v268_v21, %v209_v29  ;;  %v211_v30 = vpop.f32.mrb[5].mxu0 }
 0x16e   :  { %v271_v31 = vadd.f32 %v270_v22, %v211_v30  ;;  %v213_v32 = vpop.f32.mrb[6].mxu0 }
 0x16f   :  { %v519_v33 = vadd.f32 %v512_v25, %v269_v16  ;;  %v214_v34 = vpop.f32.mrb[7].mxu0  ;;  %v1190_v25 = vld [vmem:[%s1805_s3] sm:$0x3] }
 0x170   :  { %v520_v35 = vadd.f32 %v514_v26, %v271_v31  ;;  %v1195_v31 = vrot.slane %v1190_v25, %v1708_v42  ;;  %v1199_v34 = vrot.slane %v1190_v25, %v1714_v44 }
 0x17d   :  { %v809_v37 = vpop.f32.mrb[12].mxu1 }
 0x17e   :  { %v811_v39 = vpop.f32.mrb[13].mxu1 }
 0x17f   :  { %v813_v40 = vpop.f32.mrb[14].mxu1 }
 0x180   :  { %v814_v41 = vpop.f32.mrb[15].mxu1 }
 0x189   :  { %v449_v47 = vpop.f32.mrb[0].mxu0 }
 0x18a   :  { %v596_v48 = vmul.f32 %v589_v45, %v449_v47  ;;  %v451_v49 = vpop.f32.mrb[1].mxu0 }
 0x18b   :  { %v597_v50 = vmul.f32 %v593_v46, %v451_v49  ;;  %v453_v51 = vpop.f32.mrb[2].mxu0 }
 0x18c   :  { %v598_v53 = vadd.f32 %v596_v48, %v519_v33  ;;  %v454_v54 = vpop.f32.mrb[3].mxu0 }
 0x18d   :  { %v599_v55 = vadd.f32 %v597_v50, %v520_v35 }
 0x191   :  { %v575_v58 = vpop.f32.mrb[8].mxu0 }
 0x192   :  { %v612_v59 = vmul.f32 %v605_v56, %v575_v58  ;;  %v577_v60 = vpop.f32.mrb[9].mxu0 }
 0x193   :  { %v613_v61 = vmul.f32 %v609_v57, %v577_v60  ;;  %v579_v62 = vpop.f32.mrb[10].mxu0 }
 0x194   :  { %v1723_v63 = vadd.f32 %v612_v59, %v598_v53  ;;  %v580_v0 = vpop.f32.mrb[11].mxu0 }
 0x195   :  { %v1725_v1 = vadd.f32 %v613_v61, %v599_v55 }
 0x196   :  { %v622_v2 = vsel %vm621_vm11, %v1723_v63, 0.0  ;;  %v627_v3 = vmul.f32 %v1723_v63, %v1723_v63 }
 0x197   :  { %v623_v5 = vsel %vm621_vm11, %v1725_v1, 0.0  ;;  %v628_v6 = vmul.f32 %v1725_v1, %v1725_v1  ;;  %v618_v7 = vcombine.low %v1723_v63, %v1725_v1 }
 0x198   :  { %v624_v8 = vadd.f32 %v623_v5, %v622_v2  ;;  %v629_v9 = vsel %vm621_vm11, %v627_v3, 0.0 }
 0x199   :  { %v630_v10 = vsel %vm621_vm11, %v628_v6, 0.0  ;;  %v1239_v6 = vld [vmem:[%s1802_s0] sm:$0x33] }
 0x19a   :  { %625 = vadd.xlane.f32.xlu0 %v624_v8  ;;  %v631_v11 = vadd.f32 %v630_v10, %v629_v9  ;;  %v1241_v8 = vunpack.c.l.bf16 %v1239_v6  ;;  %v1242_v9 = vunpack.c.h.bf16 %v1239_v6  ;;  %v1240_v10 = vld [vmem:[%s1802_s0 + $0x8] sm:$0x3] }
 0x19c   :  { %v867_v12 = vpop.f32.mrb[12].mxu0 }
 0x19d   :  { %v868_v13 = vadd.f32 %v867_v12, %v809_v37  ;;  %v869_v14 = vpop.f32.mrb[13].mxu0  ;;  %v1232_v12 = vld [vmem:[%s1806_s4] sm:$0xf] }
 0x19e   :  { %v870_v15 = vadd.f32 %v869_v14, %v811_v39  ;;  %632 = vadd.xlane.f32.xlu0 %v631_v11  ;;  %v871_v17 = vpop.f32.mrb[14].mxu0  ;;  %v1357_v11 = vld [vmem:[%s1802_s0 + $0xc] sm:$0x33]  ;;  %v1274_v14 = vcombine.low %v1241_v8, %v1242_v9 }
 0x19f   :  { %v872_v18 = vpop.f32.mrb[15].mxu0  ;;  %v1290_v17 = vunpack.c.h.bf16 %v1357_v11 }
 0x1a1   :  { %v1043_v19 = vpop.f32.mrb[8].mxu1 }
 0x1a2   :  { %v1045_v4 = vpop.f32.mrb[9].mxu1  ;;  %v1186_v27 = vmul.f32 %v1179_v23, %v1043_v19  ;;  %v1358_v19 = vld [vmem:[%s1802_s0 + $0x14] sm:$0x3] }
 0x1a3   :  { %v1047_v21 = vpop.f32.mrb[10].mxu1  ;;  %v1187_v16 = vmul.f32 %v1183_v24, %v1045_v4  ;;  %v1236_v4 = vld [vmem:[%s1807_s5] sm:$0xf]  ;;  %v1291_v23 = vunpack.c.l.bf16 %v1358_v19 }
 0x1a4   :  { %v1048_v22 = vpop.f32.mrb[11].mxu1 }
 0x1a8   :  { %v1104_v26 = vpop.f32.mrb[16].mxu0 }
 0x1a9   :  { %v1111_v28 = vadd.f32 %v1104_v26, %v868_v13  ;;  %v1106_v29 = vpop.f32.mrb[17].mxu0  ;;  %v1243_v13 = vunpack.c.l.bf16 %v1240_v10 }
 0x1aa   :  { %v1112_v30 = vadd.f32 %v1106_v29, %v870_v15  ;;  %v1108_v32 = vpop.f32.mrb[18].mxu0  ;;  %v1289_v15 = vunpack.c.l.bf16 %v1357_v11 }
 0x1ab   :  { %v1188_v33 = vadd.f32 %v1186_v27, %v1111_v28  ;;  %v1109_v35 = vpop.f32.mrb[19].mxu0  ;;  %v1405_v22 = vpack.i.bf16 %v1243_v13, %v1274_v14  ;;  %v1433_v27 = vmov 839922192  }
 0x1ac   :  { %v1189_v36 = vadd.f32 %v1187_v16, %v1112_v30  ;;  %v1298_v24 = vcombine.low %v1289_v15, %v1290_v17  ;;  %v1250_v28 = vunpack.c.l.s4 %v1433_v27 }
 0x1ad   :  { %v1165_v37 = vpop.f32.mrb[16].mxu1 }
 0x1ae   :  { %v1202_v39 = vmul.f32 %v1195_v31, %v1165_v37  ;;  %v1167_v40 = vpop.f32.mrb[17].mxu1  ;;  %v1410_v26 = vpack.i.bf16 %v1291_v23, %v1298_v24  ;;  %v1251_v29 = vunpack.c.0.s8 %v1250_v28 }
 0x1af   :  { %v1203_v41 = vmul.f32 %v1199_v34, %v1167_v40  ;;  %v1169_v43 = vpop.f32.mrb[18].mxu1 }
 0x1b0   :  { %v1749_v45 = vadd.f32 %v1202_v39, %v1188_v33  ;;  %v1170_v46 = vpop.f32.mrb[19].mxu1  ;;  %v1254_v16 = vsub.s32 %v1251_v29, %v1705_v38 }
 0x1b1   :  { %v1751_v47 = vadd.f32 %v1203_v41, %v1189_v36 }
 0x1b2   :  { %v1212_v48 = vsel %vm621_vm11, %v1749_v45, 0.0  ;;  %v1217_v42 = vmul.f32 %v1749_v45, %v1749_v45 }
 0x1b3   :  { %v1213_v44 = vsel %vm621_vm11, %v1751_v47, 0.0  ;;  %v1218_v49 = vmul.f32 %v1751_v47, %v1751_v47  ;;  %v1208_v50 = vcombine.low %v1749_v45, %v1751_v47 }
 0x1b4   :  { %v1214_v51 = vadd.f32 %v1213_v44, %v1212_v48  ;;  %v1219_v52 = vsel %vm621_vm11, %v1217_v42, 0.0 }
 0x1b5   :  { %v1220_v53 = vsel %vm621_vm11, %v1218_v49, 0.0 }
 0x1b6   :  { %1215 = vadd.xlane.f32.xlu1 %v1214_v51  ;;  %v1221_v54 = vadd.f32 %v1220_v53, %v1219_v52 }
 0x1b8   :  { %1222 = vadd.xlane.f32.xlu0 %v1221_v54 }
 0x227   :  { %v626_v55 = vpop.xlane.xlu0 %625 }
 0x22b   :  { %v633_v56 = vpop.xlane.xlu0 %632 }
 0x243   :  { %v1216_v57 = vpop.xlane.xlu1 %1215 }
 0x244   :  { %v1224_v58 = vadd.f32 %v1216_v57, %v626_v55 }
 0x245   :  { %v1223_v59 = vpop.xlane.xlu0 %1222 }
 0x246   :  { %v1227_v60 = vmul.f32 0.001953125, %v1224_v58  ;;  %v1225_v61 = vadd.f32 %v1223_v59, %v633_v56 }
 0x248   :  { %v1229_v62 = vmul.f32 %v1227_v60, %v1227_v60  ;;  %v1228_v0 = vmul.f32 0.001953125, %v1225_v61 }
 0x24a   :  { %v1230_v2 = vsub.f32 %v1228_v0, %v1229_v62 }
 0x24c   :  { %v1231_v3 = vmax.f32 %v1230_v2, 0.0 }
 0x24e   :  { %v1233_v5 = vadd.f32 1e-05, %v1231_v3 }
 0x250   :  { %1421 = vrsqrt.f32 %v1233_v5 }
 0x25a   :  { %v1422_v18 = vpop.eup %1421 }
 0x25b   :  { %v1235_v20 = vmul.f32 %v1422_v18, %v1232_v12 }
 0x25d   :  { %1247 = vperm.xlu1 %1403, %v1235_v20   ;;  %v1237_v21 = vmul.f32 %v1235_v20, %v1227_v60 }
 0x25f   :  { %v1238_v25 = vsub.f32 %v1236_v4, %v1237_v21 }
 0x261   :  { %1260 = vperm.xlu0 %1404, %v1238_v25   ;;  %1406 = vrot.lane.b32.xlu1 %v1405_v22, %s1427_s8 }
 0x265   :  { %1411 = vrot.lane.b32.xlu1 %v1410_v26, %s1427_s8 }
 0x2dc   :  { %v1248_v30 = vpop.permute.xlu1 %1247 }
 0x2dd   :  { %v1255_v31 = vrot.slane %v1248_v30, %v1254_v16 }
 0x2df   :  { %v1257_v37 = vmul.f32 %v1255_v31, %v618_v7  ;;  %v1293_v44 = vmul.f32 %v1255_v31, %v1208_v50 }
 0x2e0   :  { %v1407_v32 = vpop.permute.xlu1 %1406  ;;  %v1261_v33 = vpop.permute.xlu0 %1260 }
 0x2e1   :  { %v1409_v34 = vunpack.i.h.bf16 %v1407_v32  ;;  %v1408_v35 = vunpack.i.l.bf16 %v1407_v32  ;;  %v1268_v36 = vrot.slane %v1261_v33, %v1254_v16 }
 0x2e3   :  { %v1280_v39 = vrot.slane %v1409_v34, 4  ;;  %v1279_v40 = vrot.slane %v1408_v35, 4  ;;  %v1270_v46 = vadd.f32 %v1268_v36, %v1257_v37  ;;  %v1294_v63 = vadd.f32 %v1293_v44, %v1268_v36 }
 0x2e4   :  { %v1412_v41 = vpop.permute.xlu1 %1411 }
 0x2e5   :  { %v1281_v43 = vsel %vm621_vm11, %v1279_v40, %v1280_v39  ;;  %v1414_v48 = vunpack.i.h.bf16 %v1412_v41  ;;  %v1413_v42 = vunpack.i.l.bf16 %v1412_v41 }
 0x2e6   :  { %v1283_v38 = vsel %vm163_vm6, %v1408_v35, %v1281_v43 }
 0x2e7   :  { %v1285_v49 = vadd.f32 %v1283_v38, %v1270_v46  ;;  %v1304_v51 = vrot.slane %v1414_v48, 4  ;;  %v1303_v52 = vrot.slane %v1413_v42, 4 }
 0x2e9   :  { %1286 = vst [vmem:[%s1808_s6] sm:$0xff] %v1285_v49  ;;  %v1305_v1 = vsel %vm621_vm11, %v1303_v52, %v1304_v51 }
 0x2ea   :  { %v1306_v7 = vsel %vm163_vm6, %v1413_v42, %v1305_v1 }
 0x2eb   :  { %v1308_v53 = vadd.f32 %v1306_v7, %v1294_v63 }
 0x2ed   :  { %1359 = vst [vmem:[%s1808_s6 + $0x8] sm:$0xff] %v1308_v53 }

</bundles_post_ra>
